<compile_context>
chip_gen: v7x
topology: tpu7x:2x2x1
jax: 0.10.0
libtpu: 0.0.40
codegen_flags: <defaults>
</compile_context>

<pallas_src>
from functools import partial

import jax
import jax.numpy as jnp
from jax.experimental import pallas as pl
from jax.experimental.pallas import tpu as pltpu


VMEM_LIMIT_BYTES = 64 * 1024 * 1024


def _pick_tile(n, preferred):
    """Largest tile <= preferred that evenly divides n (keeps blocks exact)."""
    for t in (preferred, 512, 256, 128, 64, 32, 16, 8):
        if t <= n and n % t == 0:
            return t
    return n


# --------------------------------------------------------------------------- #
# Kernel 1: pseudo coordinate  pseudo = rsqrt(max(in_degree, 1))
# --------------------------------------------------------------------------- #
def _pseudo_kernel(adj_ref, ps_ref, acc_ref):
    j = pl.program_id(1)

    @pl.when(j == 0)
    def _():
        acc_ref[...] = jnp.zeros_like(acc_ref)

    # Row sums of the bf16 0/1 adjacency accumulated in f32 (exact).
    acc_ref[...] += jnp.sum(adj_ref[...].astype(jnp.float32), axis=1, keepdims=True)

    @pl.when(j == pl.num_programs(1) - 1)
    def _():
        ps_ref[...] = jax.lax.rsqrt(jnp.maximum(acc_ref[...], 1.0))


def _compute_pseudo(adj_bf16, tm, tk):
    N = adj_bf16.shape[0]
    return pl.pallas_call(
        _pseudo_kernel,
        out_shape=jax.ShapeDtypeStruct((N, 1), jnp.float32),
        grid_spec=pltpu.PrefetchScalarGridSpec(
            num_scalar_prefetch=0,
            grid=(N // tm, N // tk),
            in_specs=[pl.BlockSpec((tm, tk), lambda i, j: (i, j))],
            out_specs=pl.BlockSpec((tm, 1), lambda i, j: (i, 0)),
            scratch_shapes=[pltpu.VMEM((tm, 1), jnp.float32)],
        ),
        compiler_params=pltpu.CompilerParams(
            dimension_semantics=("parallel", "arbitrary"),
            vmem_limit_bytes=VMEM_LIMIT_BYTES,
        ),
        cost_estimate=pl.CostEstimate(
            flops=N * N, transcendentals=N, bytes_accessed=N * N * 2 + N * 4
        ),
    )(adj_bf16)


# --------------------------------------------------------------------------- #
# Kernel 2: per-mixture-kernel projection  h_proj[k] = h @ W_k^T   (lane-dense)
# --------------------------------------------------------------------------- #
def _project_kernel(h_ref, w_ref, hp_ref):
    # f32 matmul (tiny vs. propagation); result stored bf16 to halve the traffic
    # of the propagation pass that re-reads h_proj per destination tile.
    hp_ref[0] = jnp.dot(
        h_ref[...], w_ref[0], preferred_element_type=jnp.float32
    ).astype(hp_ref.dtype)


def _project(h, w_pad, tm):
    N, d_in = h.shape
    K, _, HP = w_pad.shape
    return pl.pallas_call(
        _project_kernel,
        out_shape=jax.ShapeDtypeStruct((K, N, HP), jnp.bfloat16),
        grid_spec=pltpu.PrefetchScalarGridSpec(
            num_scalar_prefetch=0,
            grid=(K, N // tm),
            in_specs=[
                pl.BlockSpec((tm, d_in), lambda k, i: (i, 0)),
                pl.BlockSpec((1, d_in, HP), lambda k, i: (k, 0, 0)),
            ],
            out_specs=pl.BlockSpec((1, tm, HP), lambda k, i: (k, i, 0)),
        ),
        compiler_params=pltpu.CompilerParams(
            dimension_semantics=("arbitrary", "parallel"),
            vmem_limit_bytes=VMEM_LIMIT_BYTES,
        ),
        cost_estimate=pl.CostEstimate(
            flops=2 * K * N * d_in * HP,
            transcendentals=0,
            bytes_accessed=K * N * d_in * 4 + K * d_in * HP * 4 + K * N * HP * 2,
        ),
    )(h, w_pad)


# --------------------------------------------------------------------------- #
# Kernel 3: fused GMM propagation for one layer
#   out = bias + sum_k t_k * (A @ (s_k * h_proj_k))
# --------------------------------------------------------------------------- #
def _gmm_prop_kernel(mu_ref, isig_ref, adj_ref, hp_ref, pd_ref, ps_ref, b_ref,
                     out_ref, acc_in_ref, acc_out_ref):
    j = pl.program_id(1)          # source tile (reduction)
    k = pl.program_id(2)          # mixture kernel (reduction, innermost)
    nj = pl.num_programs(1)
    nk = pl.num_programs(2)

    @pl.when(jnp.logical_and(j == 0, k == 0))
    def _():
        acc_out_ref[...] = jnp.zeros_like(acc_out_ref)

    @pl.when(j == 0)
    def _():
        acc_in_ref[k] = jnp.zeros_like(acc_in_ref[k])

    # Source-side Gaussian factor s_k(u), computed on the fly (EUP exp is cheap).
    du = (ps_ref[...] - mu_ref[k, 0]) * isig_ref[k, 0]            # (tk, 1) f32
    s_k = jnp.exp(-0.5 * du * du)
    msg = (s_k * hp_ref[0].astype(jnp.float32)).astype(jnp.bfloat16)
    acc_in_ref[k] = acc_in_ref[k] + jnp.dot(
        adj_ref[...], msg, preferred_element_type=jnp.float32
    )

    # After the last source tile: fold the destination-side factor t_k(v) and
    # accumulate this mixture kernel's contribution.
    @pl.when(j == nj - 1)
    def _():
        dv = (pd_ref[...] - mu_ref[k, 1]) * isig_ref[k, 1]        # (tm, 1) f32
        t_k = jnp.exp(-0.5 * dv * dv)
        acc_out_ref[...] += t_k * acc_in_ref[k]

    @pl.when(jnp.logical_and(j == nj - 1, k == nk - 1))
    def _():
        out_ref[...] = acc_out_ref[...] + b_ref[...]


def _gmm_propagate(adj_bf16, hproj, pseudo, mu, inv_sigma, b_pad, tm, tk):
    N = adj_bf16.shape[0]
    K, _, HP = hproj.shape
    return pl.pallas_call(
        _gmm_prop_kernel,
        out_shape=jax.ShapeDtypeStruct((N, HP), jnp.float32),
        grid_spec=pltpu.PrefetchScalarGridSpec(
            num_scalar_prefetch=0,
            grid=(N // tm, N // tk, K),
            in_specs=[
                pl.BlockSpec(memory_space=pltpu.MemorySpace.SMEM),        # mu (K, 2)
                pl.BlockSpec(memory_space=pltpu.MemorySpace.SMEM),        # inv_sigma
                pl.BlockSpec((tm, tk), lambda i, j, k: (i, j)),           # adjacency
                pl.BlockSpec((1, tk, HP), lambda i, j, k: (k, j, 0)),     # h_proj (bf16)
                pl.BlockSpec((tm, 1), lambda i, j, k: (i, 0)),            # pseudo @ dst
                pl.BlockSpec((tk, 1), lambda i, j, k: (j, 0)),            # pseudo @ src
                pl.BlockSpec((1, HP), lambda i, j, k: (0, 0)),            # padded bias
            ],
            out_specs=pl.BlockSpec((tm, HP), lambda i, j, k: (i, 0)),
            scratch_shapes=[
                pltpu.VMEM((K, tm, HP), jnp.float32),   # per-kernel partial sums
                pltpu.VMEM((tm, HP), jnp.float32),      # cross-kernel accumulator
            ],
        ),
        compiler_params=pltpu.CompilerParams(
            dimension_semantics=("parallel", "arbitrary", "arbitrary"),
            vmem_limit_bytes=VMEM_LIMIT_BYTES,
        ),
        cost_estimate=pl.CostEstimate(
            flops=2 * K * N * N * HP + 2 * K * N * HP,
            transcendentals=K * N * (N // tm) + K * N,
            bytes_accessed=N * N * 2 + (N // tm) * K * N * HP * 2
            + N * HP * 4 + 2 * N * 4 + HP * 4,
        ),
    )(mu, inv_sigma, adj_bf16, hproj, pseudo, pseudo, b_pad)


# --------------------------------------------------------------------------- #
# Wrapper
# --------------------------------------------------------------------------- #
def _prep_layer(w_fc, bias, n_kernels, d_in_used, h_pad):
    """Reshape fc weight to (K, d_in_used, h_pad) and pad bias to (1, h_pad)."""
    h_out = w_fc.shape[0] // n_kernels
    d_in = w_fc.shape[1]
    w = w_fc.reshape(n_kernels, h_out, d_in).transpose(0, 2, 1)     # (K, d_in, H_out)
    w = jnp.pad(w, ((0, 0), (0, d_in_used - d_in), (0, h_pad - h_out)))
    b = jnp.pad(bias, (0, h_pad - h_out)).reshape(1, h_pad)
    return w.astype(jnp.float32), b.astype(jnp.float32)


def monet_forward(adj, x, layers, *, tm=512, tk=512):
    """adj: (N, N) dense 0/1 adjacency (adj[dst, src]); x: (N, F).
    layers: list of dicts {w_fc: (K*H_out, D_in), bias: (H_out,), mu: (K, 2),
    inv_sigma: (K, 2)} — one per GMMConv layer."""
    N = adj.shape[0]
    tm = _pick_tile(N, tm)
    tk = _pick_tile(N, tk)

    # 0/1 adjacency -> bf16 is lossless and halves HBM / VMEM traffic.
    adj_bf16 = adj.astype(jnp.bfloat16)
    pseudo = _compute_pseudo(adj_bf16, tm, tk)                      # (N, 1) f32

    h = x.astype(jnp.float32)
    h_out = x.shape[1]
    for lyr in layers:
        n_kernels = lyr["mu"].shape[0]
        h_out = lyr["bias"].shape[0]
        h_pad = pl.cdiv(h_out, 128) * 128                           # lane-dense channels
        w_pad, b_pad = _prep_layer(lyr["w_fc"], lyr["bias"], n_kernels,
                                   h.shape[1], h_pad)
        hproj = _project(h, w_pad, tm)                              # (K, N, HP) bf16
        h = _gmm_propagate(adj_bf16, hproj, pseudo,
                           lyr["mu"].astype(jnp.float32),
                           lyr["inv_sigma"].astype(jnp.float32),
                           b_pad, tm, tk)                           # (N, HP) f32
    return h[:, :h_out]


def monet_reference(adj, x, layers):
    """Pure-JAX f32 reference: per-edge 2-D Gaussian mixture weights (not factored)."""
    deg = jnp.maximum(jnp.sum(adj, axis=1), 1.0)
    pseudo = jax.lax.rsqrt(deg)                                     # (N,)
    h = x
    for lyr in layers:
        w_fc, bias = lyr["w_fc"], lyr["bias"]
        mu, inv_sigma = lyr["mu"], lyr["inv_sigma"]
        K = mu.shape[0]
        h_out = bias.shape[0]
        N = h.shape[0]
        hp = (h @ w_fc.T).reshape(N, K, h_out)                      # fc (no bias)
        gu = -0.5 * ((pseudo[:, None] - mu[None, :, 0]) * inv_sigma[None, :, 0]) ** 2
        gv = -0.5 * ((pseudo[:, None] - mu[None, :, 1]) * inv_sigma[None, :, 1]) ** 2
        w_edge = jnp.exp(gv[:, None, :] + gu[None, :, :])           # (Ndst, Nsrc, K)
        h = jnp.einsum("vu,vuk,ukh->vh", adj, w_edge, hp) + bias[None, :]
    return h


if __name__ == "__main__":
    # Small deterministic problem: N=256 nodes, in_feats=16, hiddens=[32, 32],
    # pseudo_coord=2, n_kernels=3.  tm=tk=128 forces a (2, 2, 3) grid so both
    # reduction axes (source tiles and mixture kernels) are exercised.
    N, F = 256, 16
    HIDDENS = (32, 32)
    PSEUDO_DIM = 2
    N_KERNELS = 3

    key = jax.random.PRNGKey(0)
    k_adj, k_x, *k_params = jax.random.split(key, 2 + 4 * len(HIDDENS))

    # Random symmetric 0/1 adjacency with self loops (undirected graph).
    a_rand = (jax.random.uniform(k_adj, (N, N)) < 0.05).astype(jnp.float32)
    adj = jnp.clip(a_rand + a_rand.T + jnp.eye(N, dtype=jnp.float32), 0.0, 1.0)
    x = jax.random.normal(k_x, (N, F), dtype=jnp.float32)

    layers = []
    d_in = F
    for li, h_dim in enumerate(HIDDENS):
        kw, kb, km, ks = k_params[4 * li: 4 * li + 4]
        bound = 1.0 / (d_in ** 0.5)
        layers.append(dict(
            w_fc=jax.random.uniform(kw, (N_KERNELS * h_dim, d_in), minval=-bound,
                                    maxval=bound, dtype=jnp.float32),
            bias=jax.random.uniform(kb, (h_dim,), minval=-bound, maxval=bound,
                                    dtype=jnp.float32),
            mu=0.3 * jax.random.normal(km, (N_KERNELS, PSEUDO_DIM), dtype=jnp.float32),
            inv_sigma=jax.random.uniform(ks, (N_KERNELS, PSEUDO_DIM), minval=0.5,
                                         maxval=2.0, dtype=jnp.float32),
        ))
        d_in = h_dim

    out = monet_forward(adj, x, layers, tm=128, tk=128)
    out = jax.block_until_ready(out)

    ref = monet_reference(adj, x, layers)
    assert out.shape == (N, HIDDENS[-1])
    # Tolerance accounts for the bf16 message/adjacency path on the MXU across
    # two stacked layers vs. the all-f32 reference (~0.2% per rounding step).
    err = float(jnp.max(jnp.abs(out - ref)) / jnp.maximum(1.0, jnp.max(jnp.abs(ref))))
    assert err < 2e-2, f"Pallas output mismatch vs reference: normalized max err {err}"

    print("KERNEL_OK")
</pallas_src>

<mosaic_0001>
module attributes {stable_mosaic.version = 11 : i64} {
  func.func @_pseudo_kernel(%arg0: i32, %arg1: i32, %arg2: memref<128x128xbf16, #tpu.memory_space<vmem>>, %arg3: memref<128x1xf32, #tpu.memory_space<vmem>>, %arg4: memref<128x1xf32, #tpu.memory_space<vmem>>) attributes {dimension_semantics = [#tpu.dimension_semantics<parallel>, #tpu.dimension_semantics<arbitrary>], iteration_bounds = array<i64: 2, 2>, scalar_prefetch = 0 : i64, scratch_operands = 1 : i64, tpu.core_type = #tpu.core_type<tc>, window_params = [{transform_indices = @transform_0, window_bounds = array<i64: 128, 128>}, {transform_indices = @transform_1, window_bounds = array<i64: 128, 1>}]} {
    %c0_i32 = arith.constant 0 : i32
    %0 = arith.cmpi eq, %arg1, %c0_i32 : i32
    %1 = arith.extui %0 : i1 to i32
    %c0_i32_0 = arith.constant 0 : i32
    %2 = arith.cmpi ne, %1, %c0_i32_0 : i32
    scf.if %2 {
      %cst_7 = arith.constant 0.000000e+00 : f32
      %13 = vector.broadcast %cst_7 : f32 to vector<128x1xf32>
      %c0_8 = arith.constant 0 : index
      %c0_9 = arith.constant 0 : index
      %14 = vector.load %arg4[%c0_8, %c0_9] : memref<128x1xf32, #tpu.memory_space<vmem>>, vector<128x1xf32>
      tpu.vector_store %arg4[%c0_8, %c0_9], %13 {strides = array<i32>} : memref<128x1xf32, #tpu.memory_space<vmem>>, vector<128x1xf32>,
    } else {
    }
    %c0 = arith.constant 0 : index
    %c0_1 = arith.constant 0 : index
    %3 = vector.load %arg4[%c0, %c0_1] : memref<128x1xf32, #tpu.memory_space<vmem>>, vector<128x1xf32>
    %c0_2 = arith.constant 0 : index
    %c0_3 = arith.constant 0 : index
    %4 = vector.load %arg2[%c0_2, %c0_3] : memref<128x128xbf16, #tpu.memory_space<vmem>>, vector<128x128xbf16>
    %5 = arith.extf %4 : vector<128x128xbf16> to vector<128x128xf32>
    %cst = arith.constant dense<0.000000e+00> : vector<128xf32>
    %6 = vector.multi_reduction <add>, %5, %cst [1] : vector<128x128xf32> to vector<128xf32>
    %7 = vector.shape_cast %6 : vector<128xf32> to vector<128x1xf32>
    %8 = arith.addf %3, %7 : vector<128x1xf32>
    %c0_4 = arith.constant 0 : index
    %c0_5 = arith.constant 0 : index
    %9 = vector.load %arg4[%c0_4, %c0_5] : memref<128x1xf32, #tpu.memory_space<vmem>>, vector<128x1xf32>
    tpu.vector_store %arg4[%c0_4, %c0_5], %8 {strides = array<i32>} : memref<128x1xf32, #tpu.memory_space<vmem>>, vector<128x1xf32>,
    %c1_i32 = arith.constant 1 : i32
    %10 = arith.cmpi eq, %arg1, %c1_i32 : i32
    %11 = arith.extui %10 : i1 to i32
    %c0_i32_6 = arith.constant 0 : i32
    %12 = arith.cmpi ne, %11, %c0_i32_6 : i32
    scf.if %12 {
      %c0_7 = arith.constant 0 : index
      %c0_8 = arith.constant 0 : index
      %13 = vector.load %arg4[%c0_7, %c0_8] : memref<128x1xf32, #tpu.memory_space<vmem>>, vector<128x1xf32>
      %cst_9 = arith.constant 1.000000e+00 : f32
      %14 = vector.broadcast %cst_9 : f32 to vector<128x1xf32>
      %15 = arith.maximumf %13, %14 : vector<128x1xf32>
      %16 = math.rsqrt %15 : vector<128x1xf32>
      %c0_10 = arith.constant 0 : index
      %c0_11 = arith.constant 0 : index
      %17 = vector.load %arg3[%c0_10, %c0_11] : memref<128x1xf32, #tpu.memory_space<vmem>>, vector<128x1xf32>
      tpu.vector_store %arg3[%c0_10, %c0_11], %16 {strides = array<i32>} : memref<128x1xf32, #tpu.memory_space<vmem>>, vector<128x1xf32>,
    } else {
    }
    return
  }
  func.func @transform_0(%arg0: i32, %arg1: i32) -> (i32, i32) {
    %c0_i32 = arith.constant 0 : i32
    return %arg0, %arg1 : i32, i32
  }
  func.func @transform_1(%arg0: i32, %arg1: i32) -> (i32, i32) {
    %c0_i32 = arith.constant 0 : i32
    %c0_i32_0 = arith.constant 0 : i32
    return %arg0, %c0_i32 : i32, i32
  }
}

</mosaic_0001>

<bundles_post_ra>
// kernel: tpu_custom_call.1
= control target key start
LH: loop header
LB: loop body
LE: loop exit
PB: predicated region body
PF: predicated region fallthrough
CT: control target
= control target key end

     0   :  { %6 = vsyncpa [#allocation4], 0  ;;  %s1129_s0 = inlined_call_operand.hbm [shape: bf16[256,256], index: 0, kind: input, shape index: {}]   ;;  %s1130_s1 = inlined_call_operand.hbm [shape: f32[256,1], index: 1, kind: output, shape index: {}]  }
   0x1   :  { %8 = vsyncpa [#allocation4 + $0x1], 0 }
   0x2   :  { %9 = vsyncpa [#allocation5], 0 }
   0x3   :  { %11 = vsyncpa [#allocation5 + $0x1], 0  ;;  %s826_s6 = smov 0   ;;  %s828_s7 = smov 0  }
   0x4   :  { %s830_s8 = smov 0   ;;  %s832_s9 = smov 0  }
   0x5   :  { %s834_s10 = smov 0   ;;  %s836_s11 = smov 0  }
   0x6   :  { %s838_s12 = smov 0   ;;  %s840_s13 = smov 0  }
   0x7   :  { %s842_s14 = smov 0   ;;  %s844_s15 = smov 0  }
   0x8   :  { %s846_s16 = smov 0  }
   0x9 LB: > { %s455_s17 = sadd.s32 4294967295, %s806_s16   ;;  %s456_s18 = sadd.s32 4294967294, %s806_s16   ;;  %s806_s16 = sphi %s846_s16, %s17_s16   ;;  %s802_s15 = sphi %s844_s15, %s1148_s15   ;;  %s798_s14 = sphi %s842_s14, %s1147_s14   ;;  %s794_s13 = sphi %s840_s13, %s1146_s13   ;;  %s790_s12 = sphi %s838_s12, %s1145_s12   ;;  %s786_s11 = sphi %s836_s11, %s1144_s11   ;;  %s782_s10 = sphi %s834_s10, %s1143_s10   ;;  %s778_s9 = sphi %s832_s9, %s1142_s9   ;;  %s774_s8 = sphi %s830_s8, %s1141_s8   ;;  %s770_s7 = sphi %s828_s7, %s1140_s7   ;;  %s766_s6 = sphi %s826_s6, %s1139_s6  }
   0xa   : > { %s26_s19 = sadd.s32 1, %s798_s14  ;;  %s29_s20 = sadd.s32 1, %s802_s15 }
   0xb   : > { %p27_p0 = scmp.ge.s32.totalorder %s26_s19, 2  ;;  %s38_s21 = sadd.s32 1, %s786_s11 }
   0xc   : > { %p45_p1 = scmp.ne.s32.totalorder %s786_s11, %s782_s10  ;;  %p46_p2 = scmp.eq.s32.totalorder %s806_s16, 0 }
   0xd   : > { %s1150_s19 = smov (%p27_p0, %s26_s19), 0  ;;  %s1152_s20 = smov (!%p27_p0, %s29_s20), %s802_s15 }
   0xe   : > { %s34_s22 = ssub.s32 %s798_s14, %s1150_s19  ;;  %p892_p3 = por %p46_p2, %p45_p1 }
   0xf   : > { %p31_p4 = scmp.ge.s32.totalorder %s1152_s20, 2  ;;  %p51_p5 = scmp.ne.s32.totalorder %s782_s10, %s778_s9 }
  0x10   : > { %p52_p6 = scmp.eq.s32.totalorder %s455_s17, 0  ;;  %s64_s24 = sadd.s32 1, %s774_s8 }
  0x11   : > { %s1154_s20 = smov (%p31_p4, %s1152_s20), 0  ;;  %p74_p8 = scmp.ne.s32.totalorder %s774_s8, %s770_s7 }
  0x12   : > { %p900_p7 = por %p52_p6, %p51_p5  ;;  %s33_s26 = ssub.s32 %s802_s15, %s1154_s20 }
  0x13   : > { %p75_p9 = scmp.eq.s32.totalorder %s455_s17, 3  ;;  %s35_s27 = sor.u32 %s34_s22, %s33_s26 }
  0x14   : > { %p62_p10 = scmp.eq.s32.totalorder %s33_s26, 0  ;;  %p36_p11 = scmp.eq.s32.totalorder %s35_s27, 0 }
  0x15   : > { %p908_p12 = por %p75_p9, %p74_p8  ;;  %p80_p13 = scmp.ne.s32.totalorder %s770_s7, %s766_s6 }
  0x16   : > { %s913_s29 = scalar_select %p62_p10, %s774_s8, %s64_s24  }
  0x17   : > { %s1134_s28 = scalar_select %p908_p12, 1, 0 }
  0x18   : > { %s916_s30 = scalar_select %p36_p11, %s786_s11, %s38_s21  }
  0x19   : > { %p81_p0 = scmp.eq.s32.totalorder %s456_s18, 3  ;;  %p526_p1 = scmp.lt.s32.totalorder %s806_s16, 4 }
  0x1a   : > { %s101_s3 = sand.u32 1, %s786_s11   ;;  %s473_s5 = sshll.u32 %s802_s15, 5 }
  0x1b   : > { %p921_p2 = por %p81_p0, %p80_p13  ;;  %s459_s4 = sshll.u32 %s101_s3, 6 }
  0x1c   : > { %s111_s9 = sadd.s32 %s798_s14, %s473_s5  ;;  %s105_s17 = scalar_lea.vmem [#allocation3], %s459_s4 }
  0x1d   : > { %s1135_s2 = scalar_select %p921_p2, 1, 0 }
  0x1e   : > { %s114_s22 = sshll.u32 %s105_s17, 4  ;;  %s462_s26 = sshll.u32 %s111_s9, 6  ;;  %s928_s22 = int_to_ptr.vmem [resolvable:$true] %s114_s22 }
  0x1f   : > { %s933_s21 = scalar_lea.hbm %s1129_s0, %s462_s26  ;;  %p937_p4 = pnand %p526_p1, %p892_p3 }
  0x20   : > { %s941_s4 = scalar_lea.sflag [#allocation4], %s101_s3  ;;  %s654_s5 = scalar_lea.hbm %s933_s21, 1024 }
  0x21   : > { %p655_p5 = scmp.ne.s32.totalorder %s933_s21, %s654_s5  ;;  %p656_p6 = pneg %p937_p4 }
  0x22   : > { %s659_s17 = scalar_lea.hbm %s1129_s0, 4096  ;;  %p660_p3 = scmp.lt.u32.totalorder %s933_s21, %s1129_s0 }
  0x23   : > { %p657_p8 = pnand %p656_p6, %p655_p5  ;;  %p661_p10 = scmp.lt.u32.totalorder %s659_s17, %s654_s5 }
  0x24   : > { %p663_p13 = scmp.lt.u32.totalorder %s654_s5, %s933_s21 }
  0x25   : > { %p658_p9 = pneg %p657_p8  ;;  %p662_p11 = por %p661_p10, %p660_p3 }
  0x27   : > { %p664_p0 = por %p663_p13, %p662_p11 }
  0x29   : > { %p665_p1 = pnand %p664_p0, %p658_p9 }
  0x2b   : > { %668 = shalt.err (!%p665_p1)
}
  0x2c   : > { %s669_s3 = scalar_lea.vmem %s928_s22, 1024  ;;  %s808_s27 = smov [#allocation3]  }
  0x2d   : > { %p670_p5 = scmp.ne.s32.totalorder %s928_s22, %s669_s3  ;;  %s674_s23 = sshll.u32 %s808_s27, 4  ;;  %s675_s23 = int_to_ptr.vmem [resolvable:$false] %s674_s23 }
  0x2e   : > { %s676_s9 = scalar_lea.vmem %s675_s23, 2048  ;;  %p677_p12 = scmp.lt.s32.totalorder %s928_s22, %s675_s23 }
  0x2f   : > { %p672_p8 = pnand %p670_p5, %p656_p6  ;;  %p678_p3 = scmp.lt.s32.totalorder %s676_s9, %s669_s3 }
  0x31   : > { %p673_p2 = pneg %p672_p8  ;;  %p679_p10 = por %p678_p3, %p677_p12 }
  0x33   : > { %p680_p11 = pnand %p679_p10, %p673_p2 }
  0x35   : > { %683 = shalt.err (!%p680_p11)
}
  0x36   : > { %s809_s5 = smov 128   ;;  %s810_s17 = smov 64  }
  0x37   : > { %s811_s26 = smov 4   ;;  %p463_p6 = scmp.ge.s32.totalorder %s806_s16, 1 }
  0x38   : > { %521 = dma.hbm_to_vmem [thread:$0]  (!%p937_p4), %s933_s21, 1024, %s928_s22, %s941_s4, %s809_s5, %s810_s17, %s811_s26  }
  0x39   : > { %p122_p9 = scmp.lt.s32.totalorder %s806_s16, 5 }
  0x3b   : > { %p123_p13 = pnand %p463_p6, %p122_p9 }
  0x3c   : > { %s128_s24 = sand.u32 (!%p123_p13), 1, %s782_s10  }
  0x3d   : > { %126 = sbr.rel (%p123_p13) target bundleno = 303 (0x12f), region = 24  ;;  %s464_s3 = sshll.u32 (!%p123_p13), %s128_s24, 6 }
  0x3e   : > { %s129_s27 = scalar_lea.sflag (!%p123_p13), [#allocation4], %s128_s24  ;;  %s972_s23 = scalar_lea.vmem (!%p123_p13), [#allocation3], %s464_s3 }
  0x44   : > { %757 = dma.done.wait (%p900_p7), %s129_s27, 1024  }
  0x45   : > { %759 = vsyncadd (%p900_p7), %s129_s27, 4294966272  ;;  %s148_s18 = sand.u32 1, %s770_s7   ;;  %p466_p12 = scmp.ne.s32.totalorder %s790_s12, 0 }
  0x46   : > { %s465_s22 = sshll.u32 %s148_s18, 7  ;;  %vm157_vm0 = vcmask (!%p466_p12), 7168   ;;  %v812_v0 = vmov (!%p466_p12), 0.0  }
  0x47   : > { %s981_s21 = scalar_lea.vmem [#allocation6], %s465_s22  ;;  %156 = sbr.rel (%p466_p12) target bundleno = 79 (0x4f), region = 32  ;;  %158 = vst.msk [vmem:[#allocation2] sm:$0xff] (!%p466_p12), %vm157_vm0, %v812_v0  ;;  %159 = vst.msk [vmem:[#allocation2 + $0x8] sm:$0xff] (!%p466_p12), %vm157_vm0, %v812_v0 }
  0x48   : > { %160 = vst.msk [vmem:[#allocation2 + $0x10] sm:$0xff] (!%p466_p12), %vm157_vm0, %v812_v0  ;;  %161 = vst.msk [vmem:[#allocation2 + $0x18] sm:$0xff] (!%p466_p12), %vm157_vm0, %v812_v0 }
  0x49   : > { %162 = vst.msk [vmem:[#allocation2 + $0x20] sm:$0xff] (!%p466_p12), %vm157_vm0, %v812_v0  ;;  %163 = vst.msk [vmem:[#allocation2 + $0x28] sm:$0xff] (!%p466_p12), %vm157_vm0, %v812_v0 }
  0x4a   : > { %164 = vst.msk [vmem:[#allocation2 + $0x30] sm:$0xff] (!%p466_p12), %vm157_vm0, %v812_v0  ;;  %165 = vst.msk [vmem:[#allocation2 + $0x38] sm:$0xff] (!%p466_p12), %vm157_vm0, %v812_v0 }
  0x4b   : > { %166 = vst.msk [vmem:[#allocation2 + $0x40] sm:$0xff] (!%p466_p12), %vm157_vm0, %v812_v0  ;;  %167 = vst.msk [vmem:[#allocation2 + $0x48] sm:$0xff] (!%p466_p12), %vm157_vm0, %v812_v0 }
  0x4c   : > { %168 = vst.msk [vmem:[#allocation2 + $0x50] sm:$0xff] (!%p466_p12), %vm157_vm0, %v812_v0  ;;  %169 = vst.msk [vmem:[#allocation2 + $0x58] sm:$0xff] (!%p466_p12), %vm157_vm0, %v812_v0 }
  0x4d   : > { %170 = vst.msk [vmem:[#allocation2 + $0x60] sm:$0xff] (!%p466_p12), %vm157_vm0, %v812_v0  ;;  %171 = vst.msk [vmem:[#allocation2 + $0x68] sm:$0xff] (!%p466_p12), %vm157_vm0, %v812_v0 }
  0x4e   : > { %172 = vst.msk [vmem:[#allocation2 + $0x70] sm:$0xff] %vm157_vm0, %v812_v0  ;;  %173 = vst.msk [vmem:[#allocation2 + $0x78] sm:$0xff] %vm157_vm0, %v812_v0 }
  0x4f PF: > { %v507_v1 = vld [vmem:[%s972_s23 + $0x8] sm:$0xff]   ;;  %v476_v2 = vld [vmem:[%s972_s23] sm:$0xff]   ;;  %v508_v7 = vld [vmem:[%s972_s23 + $0x10] sm:$0xff]   ;;  %vm270_vm1 = vcmask 7168   ;;  %p467_p7 = scmp.ne.s32.totalorder %s790_s12, 1 }
  0x50   : > { %v481_v3 = vunpack.c.l.bf16 %v507_v1  ;;  %v477_v4 = vunpack.c.l.bf16 %v476_v2  ;;  %v482_v5 = vunpack.c.h.bf16 %v507_v1  ;;  %v478_v6 = vunpack.c.h.bf16 %v476_v2  ;;  %v509_v10 = vld [vmem:[%s972_s23 + $0x18] sm:$0xff]   ;;  %v510_v13 = vld [vmem:[%s972_s23 + $0x20] sm:$0xff]   ;;  %v511_v16 = vld [vmem:[%s972_s23 + $0x28] sm:$0xff]  }
  0x51   : > { %v486_v8 = vunpack.c.h.bf16 %v508_v7  ;;  %v485_v9 = vunpack.c.l.bf16 %v508_v7  ;;  %v490_v11 = vunpack.c.h.bf16 %v509_v10  ;;  %v489_v12 = vunpack.c.l.bf16 %v509_v10  ;;  %v512_v19 = vld [vmem:[%s972_s23 + $0x30] sm:$0xff]   ;;  %v513_v22 = vld [vmem:[%s972_s23 + $0x38] sm:$0xff]   ;;  %v174_v26 = vld [vmem:[#allocation2] sm:$0xff] }
  0x52   : > { %226 = vadd.xlane.f32.xlu1 %v481_v3  ;;  %222 = vadd.xlane.f32.xlu0 %v477_v4  ;;  %v494_v14 = vunpack.c.h.bf16 %v510_v13  ;;  %v493_v15 = vunpack.c.l.bf16 %v510_v13  ;;  %v498_v17 = vunpack.c.h.bf16 %v511_v16  ;;  %v497_v18 = vunpack.c.l.bf16 %v511_v16  ;;  %v176_v25 = vld [vmem:[#allocation2 + $0x10] sm:$0xff]  ;;  %v177_v31 = vld [vmem:[#allocation2 + $0x18] sm:$0xff]  ;;  %v175_v32 = vld [vmem:[#allocation2 + $0x8] sm:$0xff] }
  0x53   : > { %v502_v20 = vunpack.c.h.bf16 %v512_v19  ;;  %v501_v21 = vunpack.c.l.bf16 %v512_v19  ;;  %v506_v23 = vunpack.c.h.bf16 %v513_v22  ;;  %v505_v24 = vunpack.c.l.bf16 %v513_v22  ;;  %v179_v37 = vld [vmem:[#allocation2 + $0x28] sm:$0xff]  ;;  %v178_v38 = vld [vmem:[#allocation2 + $0x20] sm:$0xff]  ;;  %v181_v43 = vld [vmem:[#allocation2 + $0x38] sm:$0xff] }
  0x54   : > { %v180_v44 = vld [vmem:[#allocation2 + $0x30] sm:$0xff]  ;;  %v183_v49 = vld [vmem:[#allocation2 + $0x48] sm:$0xff]  ;;  %v182_v50 = vld [vmem:[#allocation2 + $0x40] sm:$0xff] }
  0x55   : > { %v185_v55 = vld [vmem:[#allocation2 + $0x58] sm:$0xff]  ;;  %v184_v56 = vld [vmem:[#allocation2 + $0x50] sm:$0xff]  ;;  %v187_v61 = vld [vmem:[#allocation2 + $0x68] sm:$0xff] }
  0x56   : > { %228 = vadd.xlane.f32.xlu1 %v482_v5  ;;  %224 = vadd.xlane.f32.xlu0 %v478_v6  ;;  %v186_v62 = vld [vmem:[#allocation2 + $0x60] sm:$0xff]  ;;  %v189_v3 = vld [vmem:[#allocation2 + $0x78] sm:$0xff]  ;;  %v188_v4 = vld [vmem:[#allocation2 + $0x70] sm:$0xff] }
  0x5a   : > { %232 = vadd.xlane.f32.xlu1 %v486_v8  ;;  %230 = vadd.xlane.f32.xlu0 %v485_v9 }
  0x5e   : > { %236 = vadd.xlane.f32.xlu1 %v490_v11  ;;  %234 = vadd.xlane.f32.xlu0 %v489_v12 }
  0x62   : > { %240 = vadd.xlane.f32.xlu1 %v494_v14  ;;  %238 = vadd.xlane.f32.xlu0 %v493_v15 }
  0x66   : > { %244 = vadd.xlane.f32.xlu1 %v498_v17  ;;  %242 = vadd.xlane.f32.xlu0 %v497_v18 }
  0x6a   : > { %248 = vadd.xlane.f32.xlu1 %v502_v20  ;;  %246 = vadd.xlane.f32.xlu0 %v501_v21 }
  0x6e   : > { %252 = vadd.xlane.f32.xlu1 %v506_v23  ;;  %250 = vadd.xlane.f32.xlu0 %v505_v24 }
  0xdf   : > { %v227_v27 = vpop.xlane.xlu1 %226  ;;  %v223_v28 = vpop.xlane.xlu0 %222 }
  0xe0   : > { %v256_v29 = vadd.f32 %v227_v27, %v176_v25  ;;  %v254_v30 = vadd.f32 %v223_v28, %v174_v26 }
  0xe2   : > { %273 = vst.msk [vmem:[#allocation2 + $0x10] sm:$0xff] %vm270_vm1, %v256_v29  ;;  %271 = vst.msk [vmem:[#allocation2] sm:$0xff] %vm270_vm1, %v254_v30 }
  0xe3   : > { %v229_v33 = vpop.xlane.xlu1 %228  ;;  %v225_v34 = vpop.xlane.xlu0 %224 }
  0xe4   : > { %v257_v35 = vadd.f32 %v229_v33, %v177_v31  ;;  %v255_v36 = vadd.f32 %v225_v34, %v175_v32 }
  0xe6   : > { %274 = vst.msk [vmem:[#allocation2 + $0x18] sm:$0xff] %vm270_vm1, %v257_v35  ;;  %272 = vst.msk [vmem:[#allocation2 + $0x8] sm:$0xff] %vm270_vm1, %v255_v36 }
  0xe7   : > { %v233_v39 = vpop.xlane.xlu1 %232  ;;  %v231_v40 = vpop.xlane.xlu0 %230 }
  0xe8   : > { %v259_v41 = vadd.f32 %v233_v39, %v179_v37  ;;  %v258_v42 = vadd.f32 %v231_v40, %v178_v38 }
  0xe9   : > { %v291_v9 = vld [vmem:[#allocation2] sm:$0xff] (!%p467_p7)  ;;  %v293_v11 = vld [vmem:[#allocation2 + $0x10] sm:$0xff] (!%p467_p7) }
  0xea   : > { %276 = vst.msk [vmem:[#allocation2 + $0x28] sm:$0xff] %vm270_vm1, %v259_v41  ;;  %275 = vst.msk [vmem:[#allocation2 + $0x20] sm:$0xff] %vm270_vm1, %v258_v42  ;;  %v307_v12 = vmax.f32 (!%p467_p7), %v291_v9, 1.0  ;;  %v309_v14 = vmax.f32 (!%p467_p7), %v293_v11, 1.0 }
  0xeb   : > { %v237_v45 = vpop.xlane.xlu1 %236  ;;  %v235_v46 = vpop.xlane.xlu0 %234 }
  0xec   : > { %v261_v47 = vadd.f32 %v237_v45, %v181_v43  ;;  %v260_v48 = vadd.f32 %v235_v46, %v180_v44  ;;  %622 = vrsqrt.f32 (!%p467_p7), %v307_v12 }
  0xed   : > { %v292_v10 = vld [vmem:[#allocation2 + $0x8] sm:$0xff] (!%p467_p7)  ;;  %v294_v15 = vld [vmem:[#allocation2 + $0x18] sm:$0xff] (!%p467_p7) }
  0xee   : > { %278 = vst.msk [vmem:[#allocation2 + $0x38] sm:$0xff] %vm270_vm1, %v261_v47  ;;  %277 = vst.msk [vmem:[#allocation2 + $0x30] sm:$0xff] %vm270_vm1, %v260_v48  ;;  %v308_v13 = vmax.f32 (!%p467_p7), %v292_v10, 1.0  ;;  %v310_v18 = vmax.f32 (!%p467_p7), %v294_v15, 1.0 }
  0xef   : > { %v241_v51 = vpop.xlane.xlu1 %240  ;;  %v239_v52 = vpop.xlane.xlu0 %238 }
  0xf0   : > { %v263_v53 = vadd.f32 %v241_v51, %v183_v49  ;;  %v262_v54 = vadd.f32 %v239_v52, %v182_v50  ;;  %624 = vrsqrt.f32 (!%p467_p7), %v308_v13 }
  0xf1   : > { %v295_v16 = vld [vmem:[#allocation2 + $0x20] sm:$0xff] (!%p467_p7)  ;;  %v296_v17 = vld [vmem:[#allocation2 + $0x28] sm:$0xff] (!%p467_p7)  ;;  %626 = vrsqrt.f32 (!%p467_p7), %v309_v14 }
  0xf2   : > { %280 = vst.msk [vmem:[#allocation2 + $0x48] sm:$0xff] %vm270_vm1, %v263_v53  ;;  %279 = vst.msk [vmem:[#allocation2 + $0x40] sm:$0xff] %vm270_vm1, %v262_v54  ;;  %v311_v20 = vmax.f32 (!%p467_p7), %v295_v16, 1.0  ;;  %v312_v22 = vmax.f32 (!%p467_p7), %v296_v17, 1.0  ;;  %628 = vrsqrt.f32 (!%p467_p7), %v310_v18 }
  0xf3   : > { %v245_v57 = vpop.xlane.xlu1 %244  ;;  %v243_v58 = vpop.xlane.xlu0 %242 }
  0xf4   : > { %v265_v59 = vadd.f32 %v245_v57, %v185_v55  ;;  %v264_v60 = vadd.f32 %v243_v58, %v184_v56  ;;  %630 = vrsqrt.f32 (!%p467_p7), %v311_v20 }
  0xf5   : > { %v297_v19 = vld [vmem:[#allocation2 + $0x30] sm:$0xff] (!%p467_p7)  ;;  %v298_v21 = vld [vmem:[#allocation2 + $0x38] sm:$0xff] (!%p467_p7)  ;;  %632 = vrsqrt.f32 (!%p467_p7), %v312_v22 }
  0xf6   : > { %282 = vst.msk [vmem:[#allocation2 + $0x58] sm:$0xff] %vm270_vm1, %v265_v59  ;;  %281 = vst.msk [vmem:[#allocation2 + $0x50] sm:$0xff] %vm270_vm1, %v264_v60  ;;  %v313_v24 = vmax.f32 (!%p467_p7), %v297_v19, 1.0  ;;  %v314_v26 = vmax.f32 (!%p467_p7), %v298_v21, 1.0  ;;  %v623_v39 = vpop.eup (!%p467_p7), %622 }
  0xf7   : > { %v249_v63 = vpop.xlane.xlu1 %248  ;;  %v247_v0 = vpop.xlane.xlu0 %246  ;;  %339 = vst.msk [vmem:[%s981_s21] sm:$0xff] (!%p467_p7), %vm270_vm1, %v623_v39 }
  0xf8   : > { %v267_v1 = vadd.f32 %v249_v63, %v187_v61  ;;  %v266_v2 = vadd.f32 %v247_v0, %v186_v62  ;;  %290 = sbr.rel (%p467_p7) target bundleno = 277 (0x115), region = 36  ;;  %634 = vrsqrt.f32 (!%p467_p7), %v313_v24 }
  0xf9   : > { %v299_v23 = vld [vmem:[#allocation2 + $0x40] sm:$0xff] (!%p467_p7)  ;;  %v300_v25 = vld [vmem:[#allocation2 + $0x48] sm:$0xff] (!%p467_p7)  ;;  %636 = vrsqrt.f32 (!%p467_p7), %v314_v26 }
  0xfa   : > { %284 = vst.msk [vmem:[#allocation2 + $0x68] sm:$0xff] %vm270_vm1, %v267_v1  ;;  %283 = vst.msk [vmem:[#allocation2 + $0x60] sm:$0xff] %vm270_vm1, %v266_v2  ;;  %v315_v28 = vmax.f32 (!%p467_p7), %v299_v23, 1.0  ;;  %v316_v30 = vmax.f32 (!%p467_p7), %v300_v25, 1.0  ;;  %v625_v41 = vpop.eup (!%p467_p7), %624 }
  0xfb   : > { %v253_v5 = vpop.xlane.xlu1 %252  ;;  %v251_v6 = vpop.xlane.xlu0 %250  ;;  %340 = vst.msk [vmem:[%s981_s21 + $0x8] sm:$0xff] (!%p467_p7), %vm270_vm1, %v625_v41 }
  0xfc   : > { %v269_v7 = vadd.f32 %v253_v5, %v189_v3  ;;  %v268_v8 = vadd.f32 %v251_v6, %v188_v4  ;;  %638 = vrsqrt.f32 (!%p467_p7), %v315_v28  ;;  %v627_v43 = vpop.eup (!%p467_p7), %626 }
  0xfd   : > { %v301_v27 = vld [vmem:[#allocation2 + $0x50] sm:$0xff] (!%p467_p7)  ;;  %v302_v29 = vld [vmem:[#allocation2 + $0x58] sm:$0xff] (!%p467_p7)  ;;  %640 = vrsqrt.f32 (!%p467_p7), %v316_v30  ;;  %v629_v44 = vpop.eup (!%p467_p7), %628  ;;  %341 = vst.msk [vmem:[%s981_s21 + $0x10] sm:$0xff] (!%p467_p7), %vm270_vm1, %v627_v43 }
  0xfe   : > { %286 = vst.msk [vmem:[#allocation2 + $0x78] sm:$0xff] %vm270_vm1, %v269_v7  ;;  %285 = vst.msk [vmem:[#allocation2 + $0x70] sm:$0xff] %vm270_vm1, %v268_v8  ;;  %v317_v32 = vmax.f32 (!%p467_p7), %v301_v27, 1.0  ;;  %v318_v34 = vmax.f32 (!%p467_p7), %v302_v29, 1.0  ;;  %v631_v45 = vpop.eup (!%p467_p7), %630 }
  0xff   : > { %342 = vst.msk [vmem:[%s981_s21 + $0x18] sm:$0xff] %vm270_vm1, %v629_v44  ;;  %v633_v46 = vpop.eup %632  ;;  %343 = vst.msk [vmem:[%s981_s21 + $0x20] sm:$0xff] %vm270_vm1, %v631_v45 }
 0x100   : > { %642 = vrsqrt.f32 %v317_v32  ;;  %344 = vst.msk [vmem:[%s981_s21 + $0x28] sm:$0xff] %vm270_vm1, %v633_v46 }
 0x101   : > { %v303_v31 = vld [vmem:[#allocation2 + $0x60] sm:$0xff]  ;;  %v304_v33 = vld [vmem:[#allocation2 + $0x68] sm:$0xff]  ;;  %644 = vrsqrt.f32 %v318_v34 }
 0x102   : > { %v319_v36 = vmax.f32 %v303_v31, 1.0  ;;  %v320_v38 = vmax.f32 %v304_v33, 1.0  ;;  %v635_v47 = vpop.eup %634 }
 0x103   : > { %v637_v48 = vpop.eup %636  ;;  %345 = vst.msk [vmem:[%s981_s21 + $0x30] sm:$0xff] %vm270_vm1, %v635_v47 }
 0x104   : > { %646 = vrsqrt.f32 %v319_v36  ;;  %346 = vst.msk [vmem:[%s981_s21 + $0x38] sm:$0xff] %vm270_vm1, %v637_v48 }
 0x105   : > { %v305_v35 = vld [vmem:[#allocation2 + $0x70] sm:$0xff]  ;;  %v306_v37 = vld [vmem:[#allocation2 + $0x78] sm:$0xff]  ;;  %648 = vrsqrt.f32 %v320_v38 }
 0x106   : > { %v321_v40 = vmax.f32 %v305_v35, 1.0  ;;  %v322_v42 = vmax.f32 %v306_v37, 1.0  ;;  %v639_v49 = vpop.eup %638 }
 0x107   : > { %v641_v50 = vpop.eup %640  ;;  %347 = vst.msk [vmem:[%s981_s21 + $0x40] sm:$0xff] %vm270_vm1, %v639_v49 }
 0x108   : > { %650 = vrsqrt.f32 %v321_v40  ;;  %348 = vst.msk [vmem:[%s981_s21 + $0x48] sm:$0xff] %vm270_vm1, %v641_v50 }
 0x109   : > { %652 = vrsqrt.f32 %v322_v42 }
 0x10a   : > { %v643_v51 = vpop.eup %642 }
 0x10b   : > { %v645_v52 = vpop.eup %644  ;;  %349 = vst.msk [vmem:[%s981_s21 + $0x50] sm:$0xff] %vm270_vm1, %v643_v51 }
 0x10c   : > { %350 = vst.msk [vmem:[%s981_s21 + $0x58] sm:$0xff] %vm270_vm1, %v645_v52 }
 0x10e   : > { %v647_v53 = vpop.eup %646 }
 0x10f   : > { %v649_v54 = vpop.eup %648  ;;  %351 = vst.msk [vmem:[%s981_s21 + $0x60] sm:$0xff] %vm270_vm1, %v647_v53 }
 0x110   : > { %352 = vst.msk [vmem:[%s981_s21 + $0x68] sm:$0xff] %vm270_vm1, %v649_v54 }
 0x112   : > { %v651_v55 = vpop.eup %650 }
 0x113   : > { %v653_v56 = vpop.eup %652  ;;  %353 = vst.msk [vmem:[%s981_s21 + $0x70] sm:$0xff] %vm270_vm1, %v651_v55 }
 0x114   : > { %354 = vst.msk [vmem:[%s981_s21 + $0x78] sm:$0xff] %vm270_vm1, %v653_v56 }
 0x115 PF: > { %s474_s12 = sshll.u32 %s794_s13, 11  ;;  %s369_s5 = sshll.u32 %s981_s21, 4  ;;  %s1064_s5 = int_to_ptr.vmem [resolvable:$true] %s369_s5 }
 0x116   : > { %s1061_s9 = scalar_lea.hbm %s1130_s1, %s474_s12  ;;  %s1068_s17 = scalar_lea.sflag [#allocation5], %s148_s18 }
 0x117   : > { %s684_s26 = scalar_lea.vmem %s1064_s5, 2048  ;;  %p1137_p4 = scmp.ne.s32.totalorder %s1134_s28, 0 }
 0x118   : > { %p685_p2 = scmp.ne.s32.totalorder %s1064_s5, %s684_s26  ;;  %s813_s13 = smov [#allocation6]  }
 0x119   : > { %s688_s24 = sshll.u32 %s813_s13, 4  ;;  %s689_s24 = int_to_ptr.vmem [resolvable:$false] %s688_s24 }
 0x11a   : > { %p686_p0 = pnand %p685_p2, %p1137_p4  ;;  %s690_s3 = scalar_lea.vmem %s689_s24, 4096 }
 0x11b   : > { %p691_p5 = scmp.lt.s32.totalorder %s1064_s5, %s689_s24  ;;  %p692_p8 = scmp.lt.s32.totalorder %s690_s3, %s684_s26 }
 0x11c   : > { %p687_p1 = pneg %p686_p0 }
 0x11d   : > { %p693_p3 = por %p692_p8, %p691_p5 }
 0x11f   : > { %p694_p10 = pnand %p693_p3, %p687_p1 }
 0x121   : > { %697 = shalt.err (!%p694_p10)
}
 0x122   : > { %s698_s27 = scalar_lea.hbm %s1061_s9, 2048  ;;  %s702_s22 = scalar_lea.hbm %s1130_s1, 4096 }
 0x123   : > { %p699_p11 = scmp.ne.s32.totalorder %s1061_s9, %s698_s27  ;;  %p703_p13 = scmp.lt.u32.totalorder %s1061_s9, %s1130_s1 }
 0x124   : > { %p704_p12 = scmp.lt.u32.totalorder %s702_s22, %s698_s27  ;;  %p706_p2 = scmp.lt.u32.totalorder %s698_s27, %s1061_s9 }
 0x125   : > { %p700_p6 = pnand %p699_p11, %p1137_p4 }
 0x126   : > { %p705_p7 = por %p704_p12, %p703_p13 }
 0x127   : > { %p701_p9 = pneg %p700_p6 }
 0x128   : > { %p707_p0 = por %p706_p2, %p705_p7 }
 0x12a   : > { %p708_p1 = pnand %p707_p0, %p701_p9 }
 0x12c   : > { %711 = shalt.err (!%p708_p1)
}
 0x12d   : > { %s814_s25 = smov 128   ;;  %s815_s4 = smov 8  }
 0x12e   : > { %516 = dma.vmem_to_hbm [thread:$0]  (%p1137_p4), %s1064_s5, 2048, %s1061_s9, %s1068_s17, %s814_s25, %s814_s25, %s815_s4  }
 0x12f PF: > { %p527_p5 = scmp.ge.s32.totalorder %s806_s16, 2  ;;  %s384_s26 = sand.u32 1, %s766_s6  }
 0x130   : > { %p1138_p8 = scmp.ne.s32.totalorder %s1135_s2, 0  ;;  %s385_s13 = scalar_lea.sflag [#allocation5], %s384_s26 }
 0x132   : > { %p523_p3 = pnand %p527_p5, %p1138_p8 }
 0x134   : > { %761 = dma.done.wait (!%p523_p3), %s385_s13, 2048  }
 0x135   : > { %763 = vsyncadd (!%p523_p3), %s385_s13, 4294965248  ;;  %s17_s16 = sadd.s32 1, %s806_s16   ;;  %s1139_s6 = smov %s770_s7 }
 0x136   : > { %p14_p10 = scmp.ge.s32.totalorder %s17_s16, 6   ;;  %s1140_s7 = smov %s774_s8 }
 0x137   : > { %s1141_s8 = smov %s913_s29  ;;  %s1142_s9 = smov %s782_s10 }
 0x138   : > { %s1143_s10 = smov %s786_s11  ;;  %s1144_s11 = smov %s916_s30 }
 0x139   : > { %s1145_s12 = smov %s798_s14  ;;  %s1146_s13 = smov %s802_s15 }
 0x13a   : > { %s1147_s14 = smov %s1150_s19  ;;  %s1148_s15 = smov %s1154_s20 }
 0x13b   :  { %16 = sbr.rel (!%p14_p10) target bundleno = 9 (0x9), region = 77 }
 0x142   :  { %390 = vsyncpa [#allocation4], 1 }
 0x143   :  { %392 = vsyncpa [#allocation4 + $0x1], 1 }
 0x144   :  { %393 = vsyncpa [#allocation5], 1 }
 0x145   :  { %395 = vsyncpa [#allocation5 + $0x1], 1 }

</bundles_post_ra>
